<compile_context>
chip_gen: v6e
topology: v6e:2x2x1
jax: 0.10.0
libtpu: 0.0.40
codegen_flags: <defaults>
</compile_context>

<pallas_src>
import math

import jax
import jax.numpy as jnp
from jax.experimental import pallas as pl
from jax.experimental.pallas import tpu as pltpu

LANES = 128  # lane width of a vreg


def _make_nca_kernel(tile_n: int, n_total: int, num_n: int, mask_tail: bool,
                     inv_exp_margin: float):
    def kernel(x_ref, labels_ref, y_ref, selfexp_ref, out_ref, p_acc, z_acc):
        j = pl.program_id(1)  # reduction axis over dataset columns (N)

        @pl.when(j == 0)
        def _init():
            p_acc[...] = jnp.zeros_like(p_acc)
            z_acc[...] = jnp.zeros_like(z_acc)

        y = y_ref[...]          # (tile_b, 1) int32, resident across the j loop
        ls = labels_ref[...]    # (1, tile_n) int32

        def accumulate(apply_mask):
            e = jnp.exp(x_ref[...].astype(jnp.float32))        # (tile_b, tile_n)
            if apply_mask:
                # Zero the out-of-range columns of the ragged last block.
                # (1, tile_n) compare broadcast into the select -> ~1 VPU op/elem.
                col = (jax.lax.broadcasted_iota(jnp.int32, (1, tile_n), 1)
                       + j * tile_n)
                e = jnp.where(col < n_total, e, 0.0)
            z_acc[...] += e
            p_acc[...] += jnp.where(y == ls, e, 0.0)

        if mask_tail:
            @pl.when(j < num_n - 1)
            def _():
                accumulate(False)          # fully in-bounds tiles: no masking

            @pl.when(j == num_n - 1)
            def _():
                accumulate(True)           # ragged tail tile: mask OOB columns
        else:
            accumulate(False)

        @pl.when(j == num_n - 1)
        def _finalize():
            s = selfexp_ref[...]                                    # (tile_b, 1)
            # Self column always satisfies same==True, so excluding it is a
            # subtraction from both p and Z (matches scatter_(..., 0) exactly).
            p = jnp.sum(p_acc[...], axis=1, keepdims=True) - s
            z = jnp.sum(z_acc[...], axis=1, keepdims=True) - s
            p_m = p * inv_exp_margin
            prob = p_m / ((z - p) + p_m)
            out_ref[...] = jnp.where(prob != 0.0, -jnp.log(prob), 0.0)

    return kernel


def nca_cross_entropy(x, labels, indexes, margin=0.0, tile_n=None, tile_b=None):
    """Pallas NCACrossEntropy forward.

    x: (B, N) f32/bf16 similarities, labels: (N,) int, indexes: (B,) int.
    Returns the scalar loss (matches the PyTorch reference).
    """
    B, N = x.shape
    if x.dtype != jnp.bfloat16:          # keep bf16 if producer emits it
        x = x.astype(jnp.float32)
    labels = labels.astype(jnp.int32)
    indexes = indexes.astype(jnp.int32)

    # ---- batch (parallel) tiling: lets Mosaic split B across 2 TensorCores ----
    if tile_b is None:
        tile_b = B // 2 if (B % 16 == 0) else B
    assert B % tile_b == 0 and (tile_b % 8 == 0 or tile_b == B), (B, tile_b)
    num_b = B // tile_b

    # ---- dataset (reduction) tiling: ~1M-element x blocks so per-grid-step
    #      overhead (~0.35 us) is well amortized, while VMEM (x double-buffer
    #      + two f32 accumulators) stays small on every generation ----
    if tile_n is None:
        tile_n = (1 << 20) // tile_b
        tile_n = max(LANES, (tile_n // LANES) * LANES)
    if tile_n >= N:
        tile_n = N            # single full-width block (block dim == array dim)
    else:
        assert tile_n % LANES == 0, tile_n
    num_n = pl.cdiv(N, tile_n)
    mask_tail = (N % tile_n) != 0   # ragged last block -> mask OOB cols in-kernel

    labels_row = labels.reshape(1, N)

    # Tiny one-off gathers in the wrapper (keeps per-element kernel work minimal).
    y = labels[indexes].reshape(B, 1)                                   # (B, 1)
    self_exp = jnp.exp(
        jnp.take_along_axis(x.astype(jnp.float32), indexes[:, None], axis=1))

    kernel = _make_nca_kernel(tile_n, N, num_n, mask_tail, 1.0 / math.exp(margin))

    itemsize = jnp.dtype(x.dtype).itemsize
    x_block = tile_b * tile_n * itemsize
    vmem_needed = (2 * x_block                       # x double buffer
                   + 2 * tile_b * tile_n * 4         # p / Z accumulators
                   + 2 * tile_n * 4                  # labels double buffer
                   + (4 << 20))                      # headroom
    vmem_limit = int(min(max(vmem_needed, 16 << 20), 48 << 20))

    neg_logp = pl.pallas_call(
        kernel,
        out_shape=jax.ShapeDtypeStruct((B, 1), jnp.float32),
        grid_spec=pltpu.PrefetchScalarGridSpec(
            num_scalar_prefetch=0,
            grid=(num_b, num_n),
            in_specs=[
                pl.BlockSpec((tile_b, tile_n), lambda i, j: (i, j)),  # x tile
                pl.BlockSpec((1, tile_n), lambda i, j: (0, j)),       # labels tile
                pl.BlockSpec((tile_b, 1), lambda i, j: (i, 0)),       # y (resident)
                pl.BlockSpec((tile_b, 1), lambda i, j: (i, 0)),       # self exp
            ],
            out_specs=pl.BlockSpec((tile_b, 1), lambda i, j: (i, 0)),
            scratch_shapes=[
                pltpu.VMEM((tile_b, tile_n), jnp.float32),   # p accumulator
                pltpu.VMEM((tile_b, tile_n), jnp.float32),   # Z accumulator
            ],
        ),
        compiler_params=pltpu.CompilerParams(
            dimension_semantics=("parallel", "arbitrary"),
            vmem_limit_bytes=vmem_limit,
        ),
    )(x, labels_row, y, self_exp)

    return jnp.sum(neg_logp) / B


def nca_cross_entropy_ref(x, labels, indexes, margin=0.0):
    """Pure-JAX reference mirroring the PyTorch module."""
    B, N = x.shape
    expx = jnp.exp(x.astype(jnp.float32))
    col = jnp.arange(N)[None, :]
    expx = jnp.where(col == indexes[:, None], 0.0, expx)
    y = labels[indexes][:, None]
    same = (y == labels[None, :])
    p = jnp.sum(expx * same.astype(jnp.float32), axis=1)
    Z = jnp.sum(expx, axis=1)
    Z_exclude = Z - p
    p = p / math.exp(margin)
    Z = Z_exclude + p
    prob = p / Z
    logp = jnp.where(prob != 0.0, jnp.log(prob), 0.0)
    return -jnp.sum(logp) / B


if __name__ == "__main__":
    B = 16          # batch size -> two parallel (8-row) B tiles
    N = 2500        # dataset size; not a tile multiple -> exercises tail masking
    NUM_CLASSES = 10
    MARGIN = 0.5

    key = jax.random.PRNGKey(0)
    kx, kperm = jax.random.split(key)

    # Deterministic synthetic "buffer" + batch.
    labels = (jnp.arange(N, dtype=jnp.int32) % NUM_CLASSES)
    indexes = jax.random.permutation(kperm, N)[:B].astype(jnp.int32)
    x = 0.5 * jax.random.normal(kx, (B, N), dtype=jnp.float32)

    # tile_n=1024, tile_b=8 -> grid (2, 3): exercises parallel-B, streamed-N,
    # and the ragged-tail (N % tile_n != 0) masked path.
    loss = nca_cross_entropy(x, labels, indexes, margin=MARGIN,
                             tile_n=1024, tile_b=8)
    loss = jax.block_until_ready(loss)

    ref = jax.block_until_ready(
        nca_cross_entropy_ref(x, labels, indexes, margin=MARGIN))
    assert jnp.allclose(loss, ref, rtol=1e-5, atol=1e-5), (loss, ref)

    # Also run the default (single full-width N block) tiling path once.
    loss2 = jax.block_until_ready(
        nca_cross_entropy(x, labels, indexes, margin=MARGIN))
    assert jnp.allclose(loss2, ref, rtol=1e-5, atol=1e-5), (loss2, ref)

    print("KERNEL_OK")
</pallas_src>

<mosaic_0001>
module attributes {stable_mosaic.version = 11 : i64} {
  func.func @kernel(%arg0: i32, %arg1: i32, %arg2: memref<8x1024xf32, #tpu.memory_space<vmem>>, %arg3: memref<1x1024xi32, #tpu.memory_space<vmem>>, %arg4: memref<8x1xi32, #tpu.memory_space<vmem>>, %arg5: memref<8x1xf32, #tpu.memory_space<vmem>>, %arg6: memref<8x1xf32, #tpu.memory_space<vmem>>, %arg7: memref<8x1024xf32, #tpu.memory_space<vmem>>, %arg8: memref<8x1024xf32, #tpu.memory_space<vmem>>) attributes {dimension_semantics = [#tpu.dimension_semantics<parallel>, #tpu.dimension_semantics<arbitrary>], iteration_bounds = array<i64: 2, 3>, scalar_prefetch = 0 : i64, scratch_operands = 2 : i64, tpu.core_type = #tpu.core_type<tc>, window_params = [{transform_indices = @transform_0, window_bounds = array<i64: 8, 1024>}, {transform_indices = @transform_1, window_bounds = array<i64: 1, 1024>}, {transform_indices = @transform_2, window_bounds = array<i64: 8, 1>}, {transform_indices = @transform_3, window_bounds = array<i64: 8, 1>}, {transform_indices = @transform_4, window_bounds = array<i64: 8, 1>}]} {
    %c0_i32 = arith.constant 0 : i32
    %0 = arith.cmpi eq, %arg1, %c0_i32 : i32
    %1 = arith.extui %0 : i1 to i32
    %c0_i32_0 = arith.constant 0 : i32
    %2 = arith.cmpi ne, %1, %c0_i32_0 : i32
    scf.if %2 {
      %cst = arith.constant 0.000000e+00 : f32
      %14 = vector.broadcast %cst : f32 to vector<8x1024xf32>
      %c0_9 = arith.constant 0 : index
      %c0_10 = arith.constant 0 : index
      %15 = vector.load %arg7[%c0_9, %c0_10] : memref<8x1024xf32, #tpu.memory_space<vmem>>, vector<8x1024xf32>
      tpu.vector_store %arg7[%c0_9, %c0_10], %14 {strides = array<i32>} : memref<8x1024xf32, #tpu.memory_space<vmem>>, vector<8x1024xf32>,
      %cst_11 = arith.constant 0.000000e+00 : f32
      %16 = vector.broadcast %cst_11 : f32 to vector<8x1024xf32>
      %c0_12 = arith.constant 0 : index
      %c0_13 = arith.constant 0 : index
      %17 = vector.load %arg8[%c0_12, %c0_13] : memref<8x1024xf32, #tpu.memory_space<vmem>>, vector<8x1024xf32>
      tpu.vector_store %arg8[%c0_12, %c0_13], %16 {strides = array<i32>} : memref<8x1024xf32, #tpu.memory_space<vmem>>, vector<8x1024xf32>,
    } else {
    }
    %c0 = arith.constant 0 : index
    %c0_1 = arith.constant 0 : index
    %3 = vector.load %arg4[%c0, %c0_1] : memref<8x1xi32, #tpu.memory_space<vmem>>, vector<8x1xi32>
    %c0_2 = arith.constant 0 : index
    %c0_3 = arith.constant 0 : index
    %4 = vector.load %arg3[%c0_2, %c0_3] : memref<1x1024xi32, #tpu.memory_space<vmem>>, vector<1x1024xi32>
    %c2_i32 = arith.constant 2 : i32
    %5 = arith.cmpi slt, %arg1, %c2_i32 : i32
    %6 = arith.extui %5 : i1 to i32
    %c0_i32_4 = arith.constant 0 : i32
    %7 = arith.cmpi ne, %6, %c0_i32_4 : i32
    scf.if %7 {
      %c0_9 = arith.constant 0 : index
      %c0_10 = arith.constant 0 : index
      %14 = vector.load %arg2[%c0_9, %c0_10] : memref<8x1024xf32, #tpu.memory_space<vmem>>, vector<8x1024xf32>
      %15 = math.exp %14 : vector<8x1024xf32>
      %c0_11 = arith.constant 0 : index
      %c0_12 = arith.constant 0 : index
      %16 = vector.load %arg8[%c0_11, %c0_12] : memref<8x1024xf32, #tpu.memory_space<vmem>>, vector<8x1024xf32>
      %17 = arith.addf %16, %15 : vector<8x1024xf32>
      %c0_13 = arith.constant 0 : index
      %c0_14 = arith.constant 0 : index
      %18 = vector.load %arg8[%c0_13, %c0_14] : memref<8x1024xf32, #tpu.memory_space<vmem>>, vector<8x1024xf32>
      tpu.vector_store %arg8[%c0_13, %c0_14], %17 {strides = array<i32>} : memref<8x1024xf32, #tpu.memory_space<vmem>>, vector<8x1024xf32>,
      %c0_15 = arith.constant 0 : index
      %c0_16 = arith.constant 0 : index
      %19 = vector.load %arg7[%c0_15, %c0_16] : memref<8x1024xf32, #tpu.memory_space<vmem>>, vector<8x1024xf32>
      %20 = vector.broadcast %3 : vector<8x1xi32> to vector<8x1024xi32>
      %21 = vector.broadcast %4 : vector<1x1024xi32> to vector<8x1024xi32>
      %22 = arith.cmpi eq, %20, %21 : vector<8x1024xi32>
      %cst = arith.constant 0.000000e+00 : f32
      %23 = vector.broadcast %cst : f32 to vector<8x1024xf32>
      %24 = arith.select %22, %15, %23 : vector<8x1024xi1>, vector<8x1024xf32>
      %25 = arith.addf %19, %24 : vector<8x1024xf32>
      %c0_17 = arith.constant 0 : index
      %c0_18 = arith.constant 0 : index
      %26 = vector.load %arg7[%c0_17, %c0_18] : memref<8x1024xf32, #tpu.memory_space<vmem>>, vector<8x1024xf32>
      tpu.vector_store %arg7[%c0_17, %c0_18], %25 {strides = array<i32>} : memref<8x1024xf32, #tpu.memory_space<vmem>>, vector<8x1024xf32>,
    } else {
    }
    %c2_i32_5 = arith.constant 2 : i32
    %8 = arith.cmpi eq, %arg1, %c2_i32_5 : i32
    %9 = arith.extui %8 : i1 to i32
    %c0_i32_6 = arith.constant 0 : i32
    %10 = arith.cmpi ne, %9, %c0_i32_6 : i32
    scf.if %10 {
      %c0_9 = arith.constant 0 : index
      %c0_10 = arith.constant 0 : index
      %14 = vector.load %arg2[%c0_9, %c0_10] : memref<8x1024xf32, #tpu.memory_space<vmem>>, vector<8x1024xf32>
      %15 = math.exp %14 : vector<8x1024xf32>
      %16 = tpu.iota {dimensions = array<i32: 1>} : vector<1x1024xi32>
      %c1024_i32 = arith.constant 1024 : i32
      %17 = arith.muli %arg1, %c1024_i32 : i32
      %18 = vector.broadcast %17 : i32 to vector<1x1024xi32>
      %19 = arith.addi %16, %18 : vector<1x1024xi32>
      %c2500_i32 = arith.constant 2500 : i32
      %20 = vector.broadcast %c2500_i32 : i32 to vector<1x1024xi32>
      %21 = arith.cmpi slt, %19, %20 : vector<1x1024xi32>
      %cst = arith.constant 0.000000e+00 : f32
      %22 = vector.shape_cast %21 : vector<1x1024xi1> to vector<1x1024xi1>
      %23 = vector.broadcast %22 : vector<1x1024xi1> to vector<8x1024xi1>
      %24 = vector.broadcast %cst : f32 to vector<8x1024xf32>
      %25 = arith.select %23, %15, %24 : vector<8x1024xi1>, vector<8x1024xf32>
      %c0_11 = arith.constant 0 : index
      %c0_12 = arith.constant 0 : index
      %26 = vector.load %arg8[%c0_11, %c0_12] : memref<8x1024xf32, #tpu.memory_space<vmem>>, vector<8x1024xf32>
      %27 = arith.addf %26, %25 : vector<8x1024xf32>
      %c0_13 = arith.constant 0 : index
      %c0_14 = arith.constant 0 : index
      %28 = vector.load %arg8[%c0_13, %c0_14] : memref<8x1024xf32, #tpu.memory_space<vmem>>, vector<8x1024xf32>
      tpu.vector_store %arg8[%c0_13, %c0_14], %27 {strides = array<i32>} : memref<8x1024xf32, #tpu.memory_space<vmem>>, vector<8x1024xf32>,
      %c0_15 = arith.constant 0 : index
      %c0_16 = arith.constant 0 : index
      %29 = vector.load %arg7[%c0_15, %c0_16] : memref<8x1024xf32, #tpu.memory_space<vmem>>, vector<8x1024xf32>
      %30 = vector.broadcast %3 : vector<8x1xi32> to vector<8x1024xi32>
      %31 = vector.broadcast %4 : vector<1x1024xi32> to vector<8x1024xi32>
      %32 = arith.cmpi eq, %30, %31 : vector<8x1024xi32>
      %cst_17 = arith.constant 0.000000e+00 : f32
      %33 = vector.broadcast %cst_17 : f32 to vector<8x1024xf32>
      %34 = arith.select %32, %25, %33 : vector<8x1024xi1>, vector<8x1024xf32>
      %35 = arith.addf %29, %34 : vector<8x1024xf32>
      %c0_18 = arith.constant 0 : index
      %c0_19 = arith.constant 0 : index
      %36 = vector.load %arg7[%c0_18, %c0_19] : memref<8x1024xf32, #tpu.memory_space<vmem>>, vector<8x1024xf32>
      tpu.vector_store %arg7[%c0_18, %c0_19], %35 {strides = array<i32>} : memref<8x1024xf32, #tpu.memory_space<vmem>>, vector<8x1024xf32>,
    } else {
    }
    %c2_i32_7 = arith.constant 2 : i32
    %11 = arith.cmpi eq, %arg1, %c2_i32_7 : i32
    %12 = arith.extui %11 : i1 to i32
    %c0_i32_8 = arith.constant 0 : i32
    %13 = arith.cmpi ne, %12, %c0_i32_8 : i32
    scf.if %13 {
      %c0_9 = arith.constant 0 : index
      %c0_10 = arith.constant 0 : index
      %14 = vector.load %arg5[%c0_9, %c0_10] : memref<8x1xf32, #tpu.memory_space<vmem>>, vector<8x1xf32>
      %c0_11 = arith.constant 0 : index
      %c0_12 = arith.constant 0 : index
      %15 = vector.load %arg7[%c0_11, %c0_12] : memref<8x1024xf32, #tpu.memory_space<vmem>>, vector<8x1024xf32>
      %cst = arith.constant dense<0.000000e+00> : vector<8xf32>
      %16 = vector.multi_reduction <add>, %15, %cst [1] : vector<8x1024xf32> to vector<8xf32>
      %17 = vector.shape_cast %16 : vector<8xf32> to vector<8x1xf32>
      %18 = arith.subf %17, %14 : vector<8x1xf32>
      %c0_13 = arith.constant 0 : index
      %c0_14 = arith.constant 0 : index
      %19 = vector.load %arg8[%c0_13, %c0_14] : memref<8x1024xf32, #tpu.memory_space<vmem>>, vector<8x1024xf32>
      %cst_15 = arith.constant dense<0.000000e+00> : vector<8xf32>
      %20 = vector.multi_reduction <add>, %19, %cst_15 [1] : vector<8x1024xf32> to vector<8xf32>
      %21 = vector.shape_cast %20 : vector<8xf32> to vector<8x1xf32>
      %22 = arith.subf %21, %14 : vector<8x1xf32>
      %cst_16 = arith.constant 0.606530666 : f32
      %23 = vector.broadcast %cst_16 : f32 to vector<8x1xf32>
      %24 = arith.mulf %18, %23 : vector<8x1xf32>
      %25 = arith.subf %22, %18 : vector<8x1xf32>
      %26 = arith.addf %25, %24 : vector<8x1xf32>
      %27 = arith.divf %24, %26 : vector<8x1xf32>
      %cst_17 = arith.constant 0.000000e+00 : f32
      %28 = vector.broadcast %cst_17 : f32 to vector<8x1xf32>
      %29 = arith.cmpf one, %27, %28 : vector<8x1xf32>
      %30 = math.log %27 : vector<8x1xf32>
      %cst_18 = arith.constant 0.000000e+00 : f32
      %31 = vector.broadcast %cst_18 : f32 to vector<8x1xf32>
      %32 = arith.subf %31, %30 : vector<8x1xf32>
      %cst_19 = arith.constant 0.000000e+00 : f32
      %33 = vector.broadcast %cst_19 : f32 to vector<8x1xf32>
      %34 = arith.select %29, %32, %33 : vector<8x1xi1>, vector<8x1xf32>
      %c0_20 = arith.constant 0 : index
      %c0_21 = arith.constant 0 : index
      %35 = vector.load %arg6[%c0_20, %c0_21] : memref<8x1xf32, #tpu.memory_space<vmem>>, vector<8x1xf32>
      tpu.vector_store %arg6[%c0_20, %c0_21], %34 {strides = array<i32>} : memref<8x1xf32, #tpu.memory_space<vmem>>, vector<8x1xf32>,
    } else {
    }
    return
  }
  func.func @transform_0(%arg0: i32, %arg1: i32) -> (i32, i32) {
    %c0_i32 = arith.constant 0 : i32
    return %arg0, %arg1 : i32, i32
  }
  func.func @transform_1(%arg0: i32, %arg1: i32) -> (i32, i32) {
    %c0_i32 = arith.constant 0 : i32
    %c0_i32_0 = arith.constant 0 : i32
    return %c0_i32, %arg1 : i32, i32
  }
  func.func @transform_2(%arg0: i32, %arg1: i32) -> (i32, i32) {
    %c0_i32 = arith.constant 0 : i32
    %c0_i32_0 = arith.constant 0 : i32
    return %arg0, %c0_i32 : i32, i32
  }
  func.func @transform_3(%arg0: i32, %arg1: i32) -> (i32, i32) {
    %c0_i32 = arith.constant 0 : i32
    %c0_i32_0 = arith.constant 0 : i32
    return %arg0, %c0_i32 : i32, i32
  }
  func.func @transform_4(%arg0: i32, %arg1: i32) -> (i32, i32) {
    %c0_i32 = arith.constant 0 : i32
    %c0_i32_0 = arith.constant 0 : i32
    return %arg0, %c0_i32 : i32, i32
  }
}

</mosaic_0001>

<bundles_post_ra>
// kernel: tpu_custom_call.1
= control target key start
LH: loop header
LB: loop body
LE: loop exit
PB: predicated region body
PF: predicated region fallthrough
CT: control target
= control target key end

     0   :  { %9 = vsyncpa [#allocation5], 0  ;;  %s1279_s0 = inlined_call_operand.hbm [shape: f32[16,2500], index: 0, kind: input, shape index: {}]   ;;  %s1280_s1 = inlined_call_operand.vmem [shape: s32[1,2500], index: 1, kind: input, shape index: {}]   ;;  %s1281_s2 = inlined_call_operand.vmem [shape: s32[16,1], index: 2, kind: input, shape index: {}]   ;;  %s1282_s3 = inlined_call_operand.vmem [shape: f32[16,1], index: 3, kind: input, shape index: {}]   ;;  %s1283_s4 = inlined_call_operand.vmem [shape: f32[16,1], index: 4, kind: output, shape index: {}]  }
   0x1   :  { %11 = vsyncpa [#allocation5 + $0x1], 0  ;;  %s1055_s15 = smov 0   ;;  %s1057_s16 = smov 0  }
   0x2   :  { %s1059_s17 = smov 0   ;;  %s1061_s18 = smov 0  }
   0x3   :  { %s1063_s19 = smov 0   ;;  %s1065_s20 = smov 0  }
   0x4   :  { %s1067_s21 = smov 0   ;;  %s1069_s22 = smov 0  }
   0x5 LB: > { %s26_s23 = sadd.s32 1, %s1016_s20  ;;  %s29_s24 = sadd.s32 1, %s1020_s21  ;;  %s1024_s22 = sphi %s1069_s22, %s17_s22   ;;  %s1020_s21 = sphi %s1067_s21, %s1291_s21   ;;  %s1016_s20 = sphi %s1065_s20, %s1290_s20   ;;  %s1012_s19 = sphi %s1063_s19, %s1289_s19   ;;  %s1008_s18 = sphi %s1061_s18, %s1288_s18   ;;  %s1004_s17 = sphi %s1059_s17, %s1287_s17   ;;  %s1000_s16 = sphi %s1057_s16, %s1286_s16   ;;  %s996_s15 = sphi %s1055_s15, %s1285_s15  }
   0x6   : > { %p27_p0 = scmp.ge.s32.totalorder %s26_s23, 3  ;;  %s802_s25 = sadd.s32 4294967295, %s1024_s22  }
   0x7   : > { %p45_p1 = scmp.ne.s32.totalorder %s1004_s17, %s1000_s16  ;;  %p46_p2 = scmp.eq.s32.totalorder %s1024_s22, 0 }
   0x8   : > { %s1293_s23 = smov (%p27_p0, %s26_s23), 0  ;;  %s1295_s24 = smov (!%p27_p0, %s29_s24), %s1020_s21 }
   0x9   : > { %s34_s26 = ssub.s32 %s1016_s20, %s1293_s23  ;;  %p31_p3 = scmp.ge.s32.totalorder %s1295_s24, 2 }
   0xa   : > { %p51_p4 = scmp.ne.s32.totalorder %s1000_s16, %s996_s15  ;;  %p47_p5 = por %p46_p2, %p45_p1 }
   0xb   : > { %p52_p6 = scmp.eq.s32.totalorder %s802_s25, 0  ;;  %s1297_s24 = smov (%p31_p3, %s1295_s24), 0 }
   0xc   : > { %s33_s28 = ssub.s32 %s1020_s21, %s1297_s24  ;;  %s38_s30 = sadd.s32 1, %s1004_s17 }
   0xd   : > { %p1107_p7 = por %p52_p6, %p51_p4  ;;  %s35_s29 = sor.u32 %s34_s26, %s33_s28 }
   0xe   : > { %p36_p8 = scmp.eq.s32.totalorder %s35_s29, 0  ;;  %p805_p9 = scmp.ge.s32.totalorder %s1024_s22, 6 }
  0x10   : > { %s1115_s5 = scalar_select %p36_p8, %s1004_s17, %s38_s30  }
  0x11   : > { %175 = sbr.rel (%p805_p9) target bundleno = 56 (0x38), region = 16 }
  0x16   : > { %178 = sbr.rel (!%p47_p5) target bundleno = 56 (0x38), region = 20  ;;  %s179_s6 = sand.u32 (%p47_p5), 1, %s1004_s17  }
  0x17   : > { %s807_s7 = sshll.u32 (%p47_p5), %s1016_s20, 3  ;;  %s806_s8 = sshll.u32 (%p47_p5), %s179_s6, 6 }
  0x18   : > { %s185_s9 = ssub.s32 (%p47_p5), 20, %s807_s7  ;;  %s1123_s12 = scalar_lea.sflag (%p47_p5), [#allocation5], %s179_s6 }
  0x19   : > { %p186_p10 = scmp.lt.s32.totalorder (%p47_p5), %s185_s9, 8  ;;  %s183_s13 = scalar_lea.vmem (%p47_p5), [#allocation4], %s806_s8 }
  0x1b   : > { %s1299_s9 = smov (!%p186_p10, %s185_s9), 8 }
  0x1c   : > { %s1120_s10 = sshll.u32 %s1299_s9, 7 }
  0x1d   : > { %s190_s11 = ssub.s32 1024, %s1120_s10 }
  0x1e   : > { %191 = vsyncadd %s1123_s12, %s190_s11  ;;  %s825_s14 = smul.u32 20, %s1020_s21  ;;  %p809_p11 = scmp.ne.s32.totalorder %s1120_s10, 0 }
  0x1f   : > { %s199_s15 = sshll.u32 %s183_s13, 4  ;;  %s936_s11 = scalar_lea.hbm %s1279_s0, 5120  ;;  %s200_s15 = int_to_ptr.vmem [resolvable:$true] %s199_s15 }
  0x20   : > { %s194_s25 = sadd.s32 %s825_s14, %s807_s7 }
  0x21   : > { %s810_s26 = sshll.u32 %s194_s25, 7 }
  0x22   : > { %s196_s30 = scalar_lea.hbm %s1279_s0, %s810_s26 }
  0x23   : > { %s932_s9 = scalar_lea.hbm %s196_s30, %s1120_s10 }
  0x24   : > { %p933_p12 = scmp.ne.s32.totalorder %s196_s30, %s932_s9  ;;  %p938_p1 = scmp.lt.s32.totalorder %s936_s11, %s932_s9 }
  0x26   : > { %p934_p13 = pnand %p933_p12, %p809_p11 }
  0x28   : > { %p935_p0 = pneg %p934_p13 }
  0x2a   : > { %p940_p2 = pnand %p938_p1, %p935_p0 }
  0x2c   : > { %943 = shalt.err (!%p940_p2)
}
  0x2d   : > { %s944_s7 = scalar_lea.vmem %s200_s15, %s1120_s10  ;;  %s1026_s13 = smov [#allocation4]  }
  0x2e   : > { %p945_p3 = scmp.ne.s32.totalorder %s200_s15, %s944_s7  ;;  %s948_s14 = sshll.u32 %s1026_s13, 4  ;;  %s949_s14 = int_to_ptr.vmem [resolvable:$false] %s948_s14 }
  0x2f   : > { %s950_s25 = scalar_lea.vmem %s949_s14, 2048  ;;  %p951_p6 = scmp.lt.s32.totalorder %s200_s15, %s949_s14 }
  0x30   : > { %p946_p4 = pnand %p945_p3, %p809_p11  ;;  %p952_p8 = scmp.lt.s32.totalorder %s950_s25, %s944_s7 }
  0x32   : > { %p947_p5 = pneg %p946_p4  ;;  %p953_p9 = por %p952_p8, %p951_p6 }
  0x34   : > { %p954_p10 = pnand %p953_p9, %p947_p5 }
  0x36   : > { %957 = shalt.err (!%p954_p10)
}
  0x37   : > { %202 = dma.hbm_to_vmem [thread:$0]  (%p809_p11), %s196_s30, %s1120_s10, %s200_s15, %s1123_s12  }
  0x38 PF: > { %p813_p12 = scmp.ge.s32.totalorder %s1024_s22, 1  ;;  %p234_p13 = scmp.lt.s32.totalorder %s1024_s22, 7 }
  0x3a   : > { %p235_p0 = pnand %p813_p12, %p234_p13 }
  0x3b   : > { %s240_s26 = sand.u32 (!%p235_p0), 1, %s1000_s16  }
  0x3c   : > { %238 = sbr.rel (%p235_p0) target bundleno = 562 (0x232), region = 36  ;;  %s814_s28 = sshll.u32 (!%p235_p0), %s240_s26, 6 }
  0x3d   : > { %s241_s29 = scalar_lea.sflag (!%p235_p0), [#allocation5], %s240_s26  ;;  %s1147_s9 = scalar_lea.vmem (!%p235_p0), [#allocation4], %s814_s28 }
  0x41   : > { %991 = dma.done.wait (%p1107_p7), %s241_s29, 1024  }
  0x42   : > { %993 = vsyncadd (%p1107_p7), %s241_s29, 4294966272  ;;  %s815_s10 = sshll.u32 %s1008_s18, 3  ;;  %p302_p11 = scmp.lt.s32.totalorder %s1012_s19, 1 }
  0x43   : > { %p294_p1 = scmp.lt.s32.totalorder %s815_s10, 19  ;;  %p819_p7 = scmp.ne.s32.totalorder %s1008_s18, 0 }
  0x44   : > { %s1301_s19 = smov (!%p302_p11, %s1012_s19), 1 }
  0x45   : > { %s1303_s10 = smov (!%p294_p1, %s815_s10), 19  ;;  %s1156_s12 = sshll.u32 %s1301_s19, 3 }
  0x46   : > { %s296_s6 = scalar_lea.vmem %s1280_s1, %s1303_s10  ;;  %s305_s11 = scalar_lea.vmem %s1281_s2, %s1156_s12 }
  0x47   : > { %s309_s14 = scalar_lea.vmem %s1282_s3, %s1156_s12  ;;  %s313_s19 = scalar_lea.vmem %s1283_s4, %s1156_s12 }
  0x48   : > { %317 = sbr.rel (%p819_p7) target bundleno = 86 (0x56), region = 44 }
  0x4d   : > { %v1027_v0 = vmov 0.0  }
  0x4e   : > { %318 = vst [vmem:[#allocation2 + $0x30] sm:$0xff] %v1027_v0  ;;  %319 = vst [vmem:[#allocation2] sm:$0xff] %v1027_v0 }
  0x4f   : > { %320 = vst [vmem:[#allocation2 + $0x18] sm:$0xff] %v1027_v0  ;;  %321 = vst [vmem:[#allocation2 + $0x10] sm:$0xff] %v1027_v0 }
  0x50   : > { %322 = vst [vmem:[#allocation2 + $0x8] sm:$0xff] %v1027_v0  ;;  %323 = vst [vmem:[#allocation2 + $0x20] sm:$0xff] %v1027_v0 }
  0x51   : > { %324 = vst [vmem:[#allocation2 + $0x28] sm:$0xff] %v1027_v0  ;;  %325 = vst [vmem:[#allocation2 + $0x38] sm:$0xff] %v1027_v0 }
  0x52   : > { %326 = vst [vmem:[#allocation3] sm:$0xff] %v1027_v0  ;;  %327 = vst [vmem:[#allocation3 + $0x18] sm:$0xff] %v1027_v0 }
  0x53   : > { %328 = vst [vmem:[#allocation3 + $0x10] sm:$0xff] %v1027_v0  ;;  %329 = vst [vmem:[#allocation3 + $0x20] sm:$0xff] %v1027_v0 }
  0x54   : > { %330 = vst [vmem:[#allocation3 + $0x28] sm:$0xff] %v1027_v0  ;;  %331 = vst [vmem:[#allocation3 + $0x8] sm:$0xff] %v1027_v0 }
  0x55   : > { %332 = vst [vmem:[#allocation3 + $0x30] sm:$0xff] %v1027_v0  ;;  %333 = vst [vmem:[#allocation3 + $0x38] sm:$0xff] %v1027_v0 }
  0x56 PF: > { %v1174_v1 = vld [vmem:[%s305_s11] sm:$0xff]  ;;  %p820_p2 = scmp.ge.s32.totalorder %s1008_s18, 2 }
  0x57   : > { %v1176_v2 = vld [vmem:[%s296_s6] sm:$0xff] }
  0x58   : > { %339 = sbr.rel (%p820_p2) target bundleno = 229 (0xe5), region = 48 }
  0x5d   : > { %v340_v3 = vld [vmem:[%s1147_s9] sm:$0xff]  ;;  %v1028_v4 = vmov 0   ;;  %v341_v5 = vld [vmem:[%s1147_s9 + $0x8] sm:$0xff]  ;;  %v342_v7 = vld [vmem:[%s1147_s9 + $0x10] sm:$0xff]  ;;  %v399_v44 = vlaneseq }
  0x5e   : > { %894 = vset.pattern.permute.xlu0 %v1028_v4  ;;  %v348_v6 = vmul.f32 1.442695, %v340_v3  ;;  %v343_v8 = vld [vmem:[%s1147_s9 + $0x18] sm:$0xff]  ;;  %v344_v9 = vld [vmem:[%s1147_s9 + $0x20] sm:$0xff]  ;;  %v350_v10 = vmul.f32 1.442695, %v341_v5 }
  0x5f   : > { %397 = vperm.xlu0 %894, %v1174_v1   ;;  %v345_v11 = vld [vmem:[%s1147_s9 + $0x28] sm:$0xff]  ;;  %v352_v12 = vmul.f32 1.442695, %v342_v7  ;;  %v346_v13 = vld [vmem:[%s1147_s9 + $0x30] sm:$0xff]  ;;  %v354_v14 = vmul.f32 1.442695, %v343_v8 }
  0x60   : > { %895 = vpow2.f32 %v348_v6  ;;  %v347_v15 = vld [vmem:[%s1147_s9 + $0x38] sm:$0xff]  ;;  %v356_v16 = vmul.f32 1.442695, %v344_v9  ;;  %v358_v17 = vmul.f32 1.442695, %v345_v11  ;;  %v364_v20 = vld [vmem:[#allocation3] sm:$0xff] }
  0x61   : > { %897 = vpow2.f32 %v350_v10  ;;  %v360_v18 = vmul.f32 1.442695, %v346_v13  ;;  %v362_v19 = vmul.f32 1.442695, %v347_v15  ;;  %v365_v23 = vld [vmem:[#allocation3 + $0x18] sm:$0xff]  ;;  %v366_v24 = vld [vmem:[#allocation3 + $0x10] sm:$0xff] }
  0x62   : > { %899 = vpow2.f32 %v352_v12  ;;  %v367_v26 = vld [vmem:[#allocation3 + $0x20] sm:$0xff]  ;;  %v368_v28 = vld [vmem:[#allocation3 + $0x28] sm:$0xff]  ;;  %v370_v34 = vld [vmem:[#allocation3 + $0x30] sm:$0xff]  ;;  %v400_v45 = vshrl.u32 %v399_v44, 7 }
  0x63   : > { %901 = vpow2.f32 %v354_v14  ;;  %v369_v31 = vld [vmem:[#allocation3 + $0x8] sm:$0xff]  ;;  %v371_v37 = vld [vmem:[#allocation3 + $0x38] sm:$0xff]  ;;  %v388_v63 = vld [vmem:[#allocation2 + $0x30] sm:$0xff] }
  0x64   : > { %903 = vpow2.f32 %v356_v16  ;;  %v401_v46 = vsub.s32 0, %v400_v45  ;;  %v405_v47 = vsub.s32 1, %v400_v45  ;;  %v409_v48 = vsub.s32 2, %v400_v45  ;;  %v389_v0 = vld [vmem:[#allocation2] sm:$0xff]  ;;  %v390_v3 = vld [vmem:[#allocation2 + $0x18] sm:$0xff]  ;;  %v391_v4 = vld [vmem:[#allocation2 + $0x10] sm:$0xff] }
  0x65   : > { %905 = vpow2.f32 %v358_v17  ;;  %v413_v49 = vsub.s32 3, %v400_v45  ;;  %v417_v50 = vsub.s32 4, %v400_v45  ;;  %v421_v51 = vsub.s32 5, %v400_v45  ;;  %v392_v5 = vld [vmem:[#allocation2 + $0x8] sm:$0xff]  ;;  %v393_v6 = vld [vmem:[#allocation2 + $0x20] sm:$0xff]  ;;  %v395_v8 = vld [vmem:[#allocation2 + $0x38] sm:$0xff] }
  0x66   : > { %907 = vpow2.f32 %v360_v18  ;;  %v425_v52 = vsub.s32 6, %v400_v45  ;;  %v429_v53 = vsub.s32 7, %v400_v45  ;;  %v402_v54 = vrot.slane %v1176_v2, %v401_v46  ;;  %v394_v7 = vld [vmem:[#allocation2 + $0x28] sm:$0xff] }
  0x67   : > { %909 = vpow2.f32 %v362_v19  ;;  %v406_v55 = vrot.slane %v1176_v2, %v405_v47  ;;  %v410_v56 = vrot.slane %v1176_v2, %v409_v48  ;;  %v414_v57 = vrot.slane %v1176_v2, %v413_v49 }
  0x68   : > { %v418_v58 = vrot.slane %v1176_v2, %v417_v50  ;;  %v422_v59 = vrot.slane %v1176_v2, %v421_v51  ;;  %v426_v60 = vrot.slane %v1176_v2, %v425_v52  ;;  %v430_v61 = vrot.slane %v1176_v2, %v429_v53 }
  0x6d   : > { %v1188_v21 = vpop.eup %895 }
  0x6e   : > { %v372_v22 = vadd.f32 %v1188_v21, %v364_v20  ;;  %v898_v25 = vpop.eup %897 }
  0x6f   : > { %v900_v27 = vpop.eup %899  ;;  %v373_v29 = vadd.f32 %v898_v25, %v365_v23 }
  0x70   : > { %380 = vst [vmem:[#allocation3] sm:$0xff] %v372_v22  ;;  %v902_v30 = vpop.eup %901  ;;  %v374_v32 = vadd.f32 %v900_v27, %v366_v24 }
  0x71   : > { %v904_v33 = vpop.eup %903  ;;  %v375_v35 = vadd.f32 %v902_v30, %v367_v26  ;;  %381 = vst [vmem:[#allocation3 + $0x18] sm:$0xff] %v373_v29 }
  0x72   : > { %v906_v36 = vpop.eup %905  ;;  %v376_v38 = vadd.f32 %v904_v33, %v368_v28  ;;  %382 = vst [vmem:[#allocation3 + $0x10] sm:$0xff] %v374_v32 }
  0x73   : > { %v908_v39 = vpop.eup %907  ;;  %v377_v40 = vadd.f32 %v906_v36, %v369_v31  ;;  %383 = vst [vmem:[#allocation3 + $0x20] sm:$0xff] %v375_v35 }
  0x74   : > { %v910_v41 = vpop.eup %909  ;;  %v378_v42 = vadd.f32 %v908_v39, %v370_v34  ;;  %384 = vst [vmem:[#allocation3 + $0x28] sm:$0xff] %v376_v38 }
  0x75   : > { %v379_v43 = vadd.f32 %v910_v41, %v371_v37  ;;  %385 = vst [vmem:[#allocation3 + $0x8] sm:$0xff] %v377_v40 }
  0x76   : > { %386 = vst [vmem:[#allocation3 + $0x30] sm:$0xff] %v378_v42 }
  0x77   : > { %387 = vst [vmem:[#allocation3 + $0x38] sm:$0xff] %v379_v43 }
  0xda   : > { %v398_v62 = vpop.permute.xlu0 %397 }
  0xdb   : > { %vm431_vm0 = vcmp.eq.s32.totalorder %v398_v62, %v402_v54  ;;  %vm432_vm1 = vcmp.eq.s32.totalorder %v398_v62, %v406_v55  ;;  %vm433_vm2 = vcmp.eq.s32.totalorder %v398_v62, %v410_v56  ;;  %vm434_vm3 = vcmp.eq.s32.totalorder %v398_v62, %v414_v57 }
  0xdc   : > { %vm435_vm4 = vcmp.eq.s32.totalorder %v398_v62, %v418_v58  ;;  %vm436_vm5 = vcmp.eq.s32.totalorder %v398_v62, %v422_v59  ;;  %vm437_vm6 = vcmp.eq.s32.totalorder %v398_v62, %v426_v60  ;;  %vm438_vm7 = vcmp.eq.s32.totalorder %v398_v62, %v430_v61 }
  0xdd   : > { %v439_v9 = vsel %vm431_vm0, %v1188_v21, 0.0  ;;  %v440_v10 = vsel %vm432_vm1, %v898_v25, 0.0  ;;  %v441_v11 = vsel %vm433_vm2, %v900_v27, 0.0  ;;  %v442_v12 = vsel %vm434_vm3, %v902_v30, 0.0 }
  0xde   : > { %v443_v13 = vsel %vm435_vm4, %v904_v33, 0.0  ;;  %v444_v14 = vsel %vm436_vm5, %v906_v36, 0.0  ;;  %v445_v15 = vsel %vm437_vm6, %v908_v39, 0.0  ;;  %v446_v16 = vsel %vm438_vm7, %v910_v41, 0.0 }
  0xdf   : > { %v447_v17 = vadd.f32 %v439_v9, %v388_v63  ;;  %v448_v18 = vadd.f32 %v440_v10, %v389_v0  ;;  %v449_v19 = vadd.f32 %v441_v11, %v390_v3  ;;  %v450_v20 = vadd.f32 %v442_v12, %v391_v4 }
  0xe0   : > { %v451_v22 = vadd.f32 %v443_v13, %v392_v5  ;;  %v452_v23 = vadd.f32 %v444_v14, %v393_v6  ;;  %v453_v24 = vadd.f32 %v445_v15, %v394_v7  ;;  %v454_v26 = vadd.f32 %v446_v16, %v395_v8 }
  0xe1   : > { %455 = vst [vmem:[#allocation2 + $0x30] sm:$0xff] %v447_v17  ;;  %456 = vst [vmem:[#allocation2] sm:$0xff] %v448_v18 }
  0xe2   : > { %457 = vst [vmem:[#allocation2 + $0x18] sm:$0xff] %v449_v19  ;;  %458 = vst [vmem:[#allocation2 + $0x10] sm:$0xff] %v450_v20 }
  0xe3   : > { %459 = vst [vmem:[#allocation2 + $0x8] sm:$0xff] %v451_v22  ;;  %460 = vst [vmem:[#allocation2 + $0x20] sm:$0xff] %v452_v23 }
  0xe4   : > { %461 = vst [vmem:[#allocation2 + $0x28] sm:$0xff] %v453_v24  ;;  %462 = vst [vmem:[#allocation2 + $0x38] sm:$0xff] %v454_v26 }
  0xe5 PF: > { %p821_p3 = scmp.ne.s32.totalorder %s1008_s18, 2 }
  0xe6   : > { %s822_s28 = sshll.u32 (!%p821_p3), %s1008_s18, 10 }
  0xe7   : > { %466 = sbr.rel (%p821_p3) target bundleno = 562 (0x232), region = 52 }
  0xec   : > { %v467_v21 = vld [vmem:[%s1147_s9] sm:$0xff]  ;;  %v468_v25 = vld [vmem:[%s1147_s9 + $0x8] sm:$0xff]  ;;  %v469_v27 = vld [vmem:[%s1147_s9 + $0x10] sm:$0xff]  ;;  %v491_v28 = vlaneseq  ;;  %v1029_v29 = vmov 0   ;;  %v501_v45 = vstv %s822_s28 }
  0xed   : > { %911 = vset.pattern.permute.xlu0 %v1029_v29  ;;  %v470_v30 = vld [vmem:[%s1147_s9 + $0x18] sm:$0xff]  ;;  %v471_v31 = vld [vmem:[%s1147_s9 + $0x20] sm:$0xff]  ;;  %v472_v32 = vld [vmem:[%s1147_s9 + $0x28] sm:$0xff]  ;;  %v475_v33 = vmul.f32 1.442695, %v467_v21 }
  0xee   : > { %575 = vperm.xlu0 %911, %v1174_v1   ;;  %v473_v34 = vld [vmem:[%s1147_s9 + $0x30] sm:$0xff]  ;;  %v477_v35 = vmul.f32 1.442695, %v468_v25  ;;  %v479_v36 = vmul.f32 1.442695, %v469_v27  ;;  %v474_v37 = vld [vmem:[%s1147_s9 + $0x38] sm:$0xff] }
  0xef   : > { %912 = vpow2.f32 %v475_v33  ;;  %v481_v38 = vmul.f32 1.442695, %v470_v30  ;;  %v483_v39 = vmul.f32 1.442695, %v471_v31  ;;  %v485_v40 = vmul.f32 1.442695, %v472_v32 }
  0xf0   : > { %914 = vpow2.f32 %v477_v35  ;;  %v492_v41 = vand.u32 127, %v491_v28  ;;  %v487_v42 = vmul.f32 1.442695, %v473_v34  ;;  %v489_v43 = vmul.f32 1.442695, %v474_v37  ;;  %v542_v57 = vld [vmem:[#allocation3] sm:$0xff] }
  0xf1   : > { %916 = vpow2.f32 %v479_v36  ;;  %v543_v60 = vld [vmem:[#allocation3 + $0x18] sm:$0xff]  ;;  %v544_v0 = vld [vmem:[#allocation3 + $0x10] sm:$0xff]  ;;  %v545_v5 = vld [vmem:[#allocation3 + $0x20] sm:$0xff]  ;;  %v578_v37 = vshrl.u32 %v491_v28, 7 }
  0xf2   : > { %918 = vpow2.f32 %v481_v38  ;;  %v493_v44 = vadd.s32 128, %v492_v41  ;;  %v494_v1 = vadd.s32 256, %v492_v41  ;;  %v495_v46 = vadd.s32 384, %v492_v41  ;;  %v546_v9 = vld [vmem:[#allocation3 + $0x28] sm:$0xff]  ;;  %v548_v17 = vld [vmem:[#allocation3 + $0x30] sm:$0xff]  ;;  %v549_v23 = vld [vmem:[#allocation3 + $0x38] sm:$0xff] }
  0xf3   : > { %920 = vpow2.f32 %v483_v39  ;;  %v496_v47 = vadd.s32 512, %v492_v41  ;;  %v502_v48 = vadd.s32 %v501_v45, %v492_v41  ;;  %v497_v49 = vadd.s32 640, %v492_v41  ;;  %v547_v13 = vld [vmem:[#allocation3 + $0x8] sm:$0xff] }
  0xf4   : > { %922 = vpow2.f32 %v485_v40  ;;  %v503_v50 = vadd.s32 %v501_v45, %v493_v44  ;;  %v498_v51 = vadd.s32 768, %v492_v41  ;;  %v504_v52 = vadd.s32 %v501_v45, %v494_v1 }
  0xf5   : > { %924 = vpow2.f32 %v487_v42  ;;  %v499_v53 = vadd.s32 896, %v492_v41  ;;  %v505_v54 = vadd.s32 %v501_v45, %v495_v46  ;;  %v506_v55 = vadd.s32 %v501_v45, %v496_v47 }
  0xf6   : > { %926 = vpow2.f32 %v489_v43  ;;  %vm510_vm8 = vcmp.lt.s32.totalorder %v502_v48, 2500  ;;  %v507_v56 = vadd.s32 %v501_v45, %v497_v49  ;;  %vm511_vm9 = vcmp.lt.s32.totalorder %v503_v50, 2500 }
  0xf7   : > { %v508_v59 = vadd.s32 %v501_v45, %v498_v51  ;;  %vm512_vm10 = vcmp.lt.s32.totalorder %v504_v52, 2500  ;;  %v509_v62 = vadd.s32 %v501_v45, %v499_v53  ;;  %vm513_vm11 = vcmp.lt.s32.totalorder %v505_v54, 2500  ;;  %v566_v53 = vld [vmem:[#allocation2 + $0x30] sm:$0xff]  ;;  %v567_v54 = vld [vmem:[#allocation2] sm:$0xff] }
  0xf8   : > { %vm514_vm12 = vcmp.lt.s32.totalorder %v506_v55, 2500  ;;  %vm515_vm13 = vcmp.lt.s32.totalorder %v507_v56, 2500  ;;  %v579_v38 = vsub.s32 0, %v578_v37  ;;  %v583_v39 = vsub.s32 1, %v578_v37  ;;  %v568_v55 = vld [vmem:[#allocation2 + $0x18] sm:$0xff]  ;;  %v569_v56 = vld [vmem:[#allocation2 + $0x10] sm:$0xff] }
  0xf9   : > { %vm516_vm14 = vcmp.lt.s32.totalorder %v508_v59, 2500  ;;  %vm517_vm15 = vcmp.lt.s32.totalorder %v509_v62, 2500  ;;  %v587_v40 = vsub.s32 2, %v578_v37  ;;  %v591_v41 = vsub.s32 3, %v578_v37  ;;  %v572_v59 = vld [vmem:[#allocation2 + $0x28] sm:$0xff] }
  0xfa   : > { %v595_v42 = vsub.s32 4, %v578_v37  ;;  %v599_v43 = vsub.s32 5, %v578_v37  ;;  %v603_v44 = vsub.s32 6, %v578_v37  ;;  %v607_v45 = vsub.s32 7, %v578_v37 }
  0xfb   : > { %v580_v1 = vrot.slane %v1176_v2, %v579_v38  ;;  %v584_v46 = vrot.slane %v1176_v2, %v583_v39  ;;  %v588_v47 = vrot.slane %v1176_v2, %v587_v40  ;;  %v592_v48 = vrot.slane %v1176_v2, %v591_v41 }
  0xfc   : > { %v913_v58 = vpop.eup %912  ;;  %v596_v49 = vrot.slane %v1176_v2, %v595_v42  ;;  %v600_v28 = vrot.slane %v1176_v2, %v599_v43  ;;  %v604_v50 = vrot.slane %v1176_v2, %v603_v44  ;;  %v608_v51 = vrot.slane %v1176_v2, %v607_v45 }
  0xfd   : > { %v915_v61 = vpop.eup %914  ;;  %v1212_v63 = vsel %vm510_vm8, %v913_v58, 0.0  ;;  %v571_v58 = vld [vmem:[#allocation2 + $0x20] sm:$0xff]  ;;  %vm688_vm8 = vcmask 7168  }
  0xfe   : > { %v917_v3 = vpop.eup %916  ;;  %v1214_v4 = vsel %vm511_vm9, %v915_v61, 0.0  ;;  %v550_v6 = vadd.f32 %v542_v57, %v1212_v63  ;;  %v570_v57 = vld [vmem:[#allocation2 + $0x8] sm:$0xff] }
  0xff   : > { %v919_v7 = vpop.eup %918  ;;  %v1217_v8 = vsel %vm512_vm10, %v917_v3, 0.0  ;;  %v551_v10 = vadd.f32 %v543_v60, %v1214_v4  ;;  %v573_v60 = vld [vmem:[#allocation2 + $0x38] sm:$0xff] }
 0x100   : > { %v921_v11 = vpop.eup %920  ;;  %v1220_v12 = vsel %vm513_vm11, %v919_v7, 0.0  ;;  %v552_v14 = vadd.f32 %v544_v0, %v1217_v8  ;;  %558 = vst [vmem:[#allocation3] sm:$0xff] %v550_v6 }
 0x101   : > { %v923_v15 = vpop.eup %922  ;;  %v1224_v16 = vsel %vm514_vm12, %v921_v11, 0.0  ;;  %v553_v18 = vadd.f32 %v545_v5, %v1220_v12  ;;  %559 = vst [vmem:[#allocation3 + $0x18] sm:$0xff] %v551_v10  ;;  %v668_v19 = vadd.f32 %v551_v10, %v550_v6 }
 0x102   : > { %v925_v20 = vpop.eup %924  ;;  %v539_v22 = vsel %vm515_vm13, %v923_v15, 0.0  ;;  %v554_v24 = vadd.f32 %v546_v9, %v1224_v16  ;;  %560 = vst [vmem:[#allocation3 + $0x10] sm:$0xff] %v552_v14 }
 0x103   : > { %v927_v26 = vpop.eup %926  ;;  %v540_v21 = vsel %vm516_vm14, %v925_v20, 0.0  ;;  %v555_v25 = vadd.f32 %v547_v13, %v539_v22  ;;  %561 = vst [vmem:[#allocation3 + $0x20] sm:$0xff] %v553_v18  ;;  %v669_v27 = vadd.f32 %v668_v19, %v552_v14 }
 0x104   : > { %v541_v29 = vsel %vm517_vm15, %v927_v26, 0.0  ;;  %v556_v30 = vadd.f32 %v548_v17, %v540_v21  ;;  %562 = vst [vmem:[#allocation3 + $0x28] sm:$0xff] %v554_v24 }
 0x105   : > { %v557_v31 = vadd.f32 %v549_v23, %v541_v29  ;;  %563 = vst [vmem:[#allocation3 + $0x8] sm:$0xff] %v555_v25  ;;  %v670_v32 = vadd.f32 %v669_v27, %v553_v18 }
 0x106   : > { %564 = vst [vmem:[#allocation3 + $0x30] sm:$0xff] %v556_v30 }
 0x107   : > { %565 = vst [vmem:[#allocation3 + $0x38] sm:$0xff] %v557_v31  ;;  %v671_v33 = vadd.f32 %v670_v32, %v554_v24 }
 0x109   : > { %v672_v34 = vadd.f32 %v671_v33, %v555_v25 }
 0x10b   : > { %v673_v35 = vadd.f32 %v672_v34, %v556_v30 }
 0x10d   : > { %v674_v36 = vadd.f32 %v673_v35, %v557_v31 }
 0x10f   : > { %675 = vadd.xlane.f32.xlu1 %v674_v36 }
 0x169   : > { %v576_v52 = vpop.permute.xlu0 %575 }
 0x16a   : > { %vm609_vm0 = vcmp.eq.s32.totalorder %v576_v52, %v580_v1  ;;  %vm610_vm1 = vcmp.eq.s32.totalorder %v576_v52, %v584_v46  ;;  %vm611_vm2 = vcmp.eq.s32.totalorder %v576_v52, %v588_v47  ;;  %vm612_vm3 = vcmp.eq.s32.totalorder %v576_v52, %v592_v48 }
 0x16b   : > { %vm613_vm4 = vcmp.eq.s32.totalorder %v576_v52, %v596_v49  ;;  %vm614_vm5 = vcmp.eq.s32.totalorder %v576_v52, %v600_v28  ;;  %vm615_vm6 = vcmp.eq.s32.totalorder %v576_v52, %v604_v50  ;;  %vm616_vm7 = vcmp.eq.s32.totalorder %v576_v52, %v608_v51 }
 0x16c   : > { %v617_v61 = vsel %vm609_vm0, %v1212_v63, 0.0  ;;  %v618_v2 = vsel %vm610_vm1, %v1214_v4, 0.0  ;;  %v619_v62 = vsel %vm611_vm2, %v1217_v8, 0.0  ;;  %v620_v0 = vsel %vm612_vm3, %v1220_v12, 0.0 }
 0x16d   : > { %v621_v3 = vsel %vm613_vm4, %v1224_v16, 0.0  ;;  %v622_v5 = vsel %vm614_vm5, %v539_v22, 0.0  ;;  %v623_v6 = vsel %vm615_vm6, %v540_v21, 0.0  ;;  %v624_v7 = vsel %vm616_vm7, %v541_v29, 0.0  ;;  %v641_v22 = vld [vmem:[%s309_s14] sm:$0xff] }
 0x16e   : > { %v625_v9 = vadd.f32 %v617_v61, %v566_v53  ;;  %v626_v10 = vadd.f32 %v618_v2, %v567_v54  ;;  %v627_v11 = vadd.f32 %v619_v62, %v568_v55  ;;  %v628_v13 = vadd.f32 %v620_v0, %v569_v56 }
 0x16f   : > { %v629_v14 = vadd.f32 %v621_v3, %v570_v57  ;;  %v630_v15 = vadd.f32 %v622_v5, %v571_v58  ;;  %v631_v17 = vadd.f32 %v623_v6, %v572_v59  ;;  %v632_v18 = vadd.f32 %v624_v7, %v573_v60 }
 0x170   : > { %633 = vst [vmem:[#allocation2 + $0x30] sm:$0xff] %v625_v9  ;;  %634 = vst [vmem:[#allocation2] sm:$0xff] %v626_v10  ;;  %v650_v63 = vadd.f32 %v626_v10, %v625_v9 }
 0x171   : > { %635 = vst [vmem:[#allocation2 + $0x18] sm:$0xff] %v627_v11  ;;  %636 = vst [vmem:[#allocation2 + $0x10] sm:$0xff] %v628_v13 }
 0x172   : > { %637 = vst [vmem:[#allocation2 + $0x8] sm:$0xff] %v629_v14  ;;  %638 = vst [vmem:[#allocation2 + $0x20] sm:$0xff] %v630_v15  ;;  %v651_v4 = vadd.f32 %v650_v63, %v627_v11 }
 0x173   : > { %639 = vst [vmem:[#allocation2 + $0x28] sm:$0xff] %v631_v17  ;;  %640 = vst [vmem:[#allocation2 + $0x38] sm:$0xff] %v632_v18 }
 0x174   : > { %v652_v8 = vadd.f32 %v651_v4, %v628_v13 }
 0x176   : > { %v653_v12 = vadd.f32 %v652_v8, %v629_v14 }
 0x178   : > { %v654_v16 = vadd.f32 %v653_v12, %v630_v15 }
 0x17a   : > { %v655_v19 = vadd.f32 %v654_v16, %v631_v17 }
 0x17c   : > { %v656_v20 = vadd.f32 %v655_v19, %v632_v18 }
 0x17e   : > { %657 = vadd.xlane.f32.xlu0 %v656_v20 }
 0x198   : > { %v676_v23 = vpop.xlane.xlu1 %675 }
 0x199   : > { %v677_v24 = vsub.f32 %v676_v23, %v641_v22 }
 0x207   : > { %v658_v26 = vpop.xlane.xlu0 %657 }
 0x208   : > { %v659_v21 = vsub.f32 %v658_v26, %v641_v22 }
 0x20a   : > { %v678_v25 = vmul.f32 0.60653067, %v659_v21  ;;  %v679_v27 = vsub.f32 %v677_v24, %v659_v21 }
 0x20c   : > { %v680_v29 = vadd.f32 %v679_v27, %v678_v25 }
 0x20e   : > { %928 = vrcp.f32 %v680_v29 }
 0x21b   : > { %v929_v30 = vpop.eup %928 }
 0x21c   : > { %v682_v31 = vmul.f32 %v929_v30, %v678_v25 }
 0x21e   : > { %930 = vlog2.f32 %v682_v31  ;;  %vm683_vm9 = vcmp.ne.f32.partialorder %v682_v31, 0.0 }
 0x22b   : > { %v931_v32 = vpop.eup %930 }
 0x22c   : > { %v685_v33 = vmul.f32 0.6931472, %v931_v32 }
 0x22e   : > { %v686_v34 = vsub.f32 0.0, %v685_v33 }
 0x230   : > { %v687_v35 = vsel %vm683_vm9, %v686_v34, 0.0 }
 0x231   : > { %689 = vst.msk [vmem:[%s313_s19] sm:$0xff] %vm688_vm8, %v687_v35 }
 0x232 PF: > { %s17_s22 = sadd.s32 1, %s1024_s22   ;;  %s1285_s15 = smov %s1000_s16 }
 0x233   : > { %p14_p4 = scmp.ge.s32.totalorder %s17_s22, 8   ;;  %s1286_s16 = smov %s1004_s17 }
 0x234   : > { %s1287_s17 = smov %s1115_s5  ;;  %s1288_s18 = smov %s1016_s20 }
 0x235   : > { %s1289_s19 = smov %s1020_s21  ;;  %s1290_s20 = smov %s1293_s23 }
 0x236   : > { %s1291_s21 = smov %s1297_s24  ;;  %16 = sbr.rel (!%p14_p4) target bundleno = 5 (0x5), region = 97 }
 0x23b   :  { %709 = vsyncpa [#allocation5], 1 }
 0x23c   :  { %711 = vsyncpa [#allocation5 + $0x1], 1 }

</bundles_post_ra>
